<compile_context>
chip_gen: v5e
topology: v5e:2x2
jax: 0.10.0
libtpu: 0.0.40
codegen_flags: <defaults>
</compile_context>

<pallas_src>
import functools

import jax
import jax.numpy as jnp
from jax import lax
from jax.experimental import pallas as pl
from jax.experimental.pallas import tpu as pltpu


def _round_up(x, m):
    return ((x + m - 1) // m) * m


def _int_pow(x, n):
    """x**n for a static positive int n via square-and-multiply (pure VPU)."""
    result = None
    base = x
    while n > 0:
        if n & 1:
            result = base if result is None else result * base
        n >>= 1
        if n:
            base = base * base
    return result


def _gem_kernel(p_ref, x_ref, o_ref, acc_ref, *, eps, hw, tc, mask_cols, int_p):
    # p_ref: (1,) f32 SMEM     x_ref: (TR, TC) VMEM input tile
    # o_ref: (TR, 1) VMEM      acc_ref: (TR, 1) f32 VMEM scratch (row partials)
    j = pl.program_id(1)
    last = pl.num_programs(1) - 1

    @pl.when(j == 0)
    def _init():
        acc_ref[...] = jnp.zeros_like(acc_ref)

    x = x_ref[...].astype(jnp.float32)
    xc = jnp.maximum(x, eps)                       # clamp(min=eps) -> xc > 0
    if int_p is not None:
        xp = _int_pow(xc, int_p)                   # pure VPU, EUP stays idle
    else:
        xp = jnp.exp(p_ref[0] * jnp.log(xc))       # 1 log + 1 exp per element

    if mask_cols:
        # Only the ragged final HW tile needs masking; interior tiles take the
        # cheap path (the ragged tile's stale tail lanes are where'd to 0).
        @pl.when(j != last)
        def _acc_interior():
            acc_ref[...] += jnp.sum(xp, axis=-1, keepdims=True)

        @pl.when(j == last)
        def _acc_edge():
            col = j * tc + lax.broadcasted_iota(jnp.int32, xp.shape, 1)
            acc_ref[...] += jnp.sum(jnp.where(col < hw, xp, 0.0),
                                    axis=-1, keepdims=True)
    else:
        acc_ref[...] += jnp.sum(xp, axis=-1, keepdims=True)

    @pl.when(j == last)
    def _finalize():
        m = acc_ref[...] * (1.0 / hw)              # true mean over H*W (> 0)
        inv_p = (1.0 / int_p) if int_p is not None else (1.0 / p_ref[0])
        o_ref[...] = jnp.exp(jnp.log(m) * inv_p).astype(o_ref.dtype)


def gem_pallas(x, p, eps=1e-6, static_p=None):
    """GeM pooling.  x: (N, C, H, W); p: (1,) learnable float.

    static_p: optional Python int.  When the exponent is known at trace time
    (e.g. the default p=3) this replaces the exp/log power with a couple of
    VPU multiplies (EUP relief on v6e/v7x).  Must match the value held in p.
    Returns (N, C, 1, 1) in x.dtype.
    """
    N, C, H, W = x.shape
    NC, HW = N * C, H * W
    x2 = x.reshape(NC, HW)
    p = jnp.asarray(p, jnp.float32).reshape((1,))
    itemsize = x2.dtype.itemsize

    # ---- tile selection (no host-side padding of x) ------------------------
    COL_CAP = 4096                        # lane-tile cap over HW
    if HW <= COL_CAP:
        TC = HW                           # full-dim block: one contiguous DMA
        mask_cols = False                 # no ragged column tile, no mask
    else:
        n_col = pl.cdiv(HW, COL_CAP)      # balance the ragged last tile
        TC = _round_up(pl.cdiv(HW, n_col), 128)
        mask_cols = (HW % TC) != 0

    target_block_bytes = 4 * 1024 * 1024
    if NC < 8:
        TR = NC                           # full-dim row block (< 8 rows)
    else:
        TR = max(8, (target_block_bytes // (max(TC, 1) * itemsize)) // 8 * 8)
        TR = min(TR, 2048)
        # v7x megacore: keep >= 4 tiles on the "parallel" row axis.
        TR = min(TR, max(8, _round_up(pl.cdiv(NC, 4), 8)))
        TR = min(TR, (NC // 8) * 8)       # multiple of 8, not exceeding NC

    grid = (pl.cdiv(NC, TR), pl.cdiv(HW, TC))
    NC_out = grid[0] * TR                 # includes ragged-row-edge slack

    # VMEM budget: double-buffered input blocks + lane-padded (TR,1) output
    # blocks + tiny accumulator scratch + compiler headroom; capped at 48 MiB
    # (v7x physical VMEM is 64 MiB).
    TC_pad = _round_up(TC, 128)
    vmem_bytes = (2 * TR * TC_pad * itemsize
                  + 2 * TR * 128 * 4
                  + TR * 128 * 4
                  + (2 << 20))
    vmem_bytes = int(min(max(vmem_bytes, 4 << 20), 48 << 20))

    int_p = None
    if static_p is not None:
        sp = int(static_p)
        if sp == static_p and sp >= 1:
            int_p = sp

    kernel = functools.partial(_gem_kernel, eps=float(eps), hw=HW, tc=TC,
                               mask_cols=mask_cols, int_p=int_p)

    out2 = pl.pallas_call(
        kernel,
        out_shape=jax.ShapeDtypeStruct((NC_out, 1), x.dtype),
        grid=grid,
        in_specs=[
            pl.BlockSpec(memory_space=pltpu.SMEM),           # p (scalar param)
            pl.BlockSpec((TR, TC), lambda i, j: (i, j)),     # x tiles
        ],
        out_specs=pl.BlockSpec((TR, 1), lambda i, j: (i, 0)),
        scratch_shapes=[pltpu.VMEM((TR, 1), jnp.float32)],
        compiler_params=pltpu.CompilerParams(
            dimension_semantics=("parallel", "arbitrary"),
            vmem_limit_bytes=vmem_bytes),
    )(p, x2)

    # Ragged row-edge tiles compute garbage for rows >= NC; slice them off.
    return out2[:NC].reshape(N, C, 1, 1)


def gem_reference(x, p, eps=1e-6):
    xc = jnp.maximum(x.astype(jnp.float32), eps)
    xp = jnp.power(xc, p[0])
    m = jnp.mean(xp, axis=(-2, -1), keepdims=True)
    return jnp.power(m, 1.0 / p[0]).astype(x.dtype)


if __name__ == "__main__":
    key = jax.random.PRNGKey(0)
    N, C, H, W = 2, 4, 16, 16
    x = jax.random.normal(key, (N, C, H, W), dtype=jnp.float32)

    # Parameter init mirrors nn.Parameter(torch.ones(1) * 3)
    p = jnp.ones((1,), dtype=jnp.float32) * 3.0
    eps = 1e-6

    ref = gem_reference(x, p, eps)

    # Dynamic-p path (learnable parameter; exp/log power).
    out = gem_pallas(x, p, eps)
    jax.block_until_ready(out)
    assert out.shape == (N, C, 1, 1), out.shape
    assert jnp.allclose(out, ref, rtol=1e-4, atol=1e-5), (
        f"dynamic-p max err {jnp.max(jnp.abs(out - ref))}")

    # Static integer-p fast path (pure-VPU power; EUP relief on v6e/v7x).
    out_s = gem_pallas(x, p, eps, static_p=3)
    jax.block_until_ready(out_s)
    assert out_s.shape == (N, C, 1, 1), out_s.shape
    assert jnp.allclose(out_s, ref, rtol=1e-4, atol=1e-5), (
        f"static-p max err {jnp.max(jnp.abs(out_s - ref))}")

    print("KERNEL_OK")
</pallas_src>

<mosaic_0001>
module attributes {stable_mosaic.version = 11 : i64} {
  func.func @_gem_kernel(%arg0: i32, %arg1: i32, %arg2: memref<1xf32, #tpu.memory_space<smem>>, %arg3: memref<8x256xf32, #tpu.memory_space<vmem>>, %arg4: memref<8x1xf32, #tpu.memory_space<vmem>>, %arg5: memref<8x1xf32, #tpu.memory_space<vmem>>) attributes {dimension_semantics = [#tpu.dimension_semantics<parallel>, #tpu.dimension_semantics<arbitrary>], iteration_bounds = array<i64: 1, 1>, scalar_prefetch = 0 : i64, scratch_operands = 1 : i64, tpu.core_type = #tpu.core_type<tc>, window_params = [{transform_indices = @transform_0, window_bounds = array<i64: 1>}, {transform_indices = @transform_1, window_bounds = array<i64: 8, 256>}, {transform_indices = @transform_2, window_bounds = array<i64: 8, 1>}]} {
    %c0_i32 = arith.constant 0 : i32
    %0 = arith.cmpi eq, %arg1, %c0_i32 : i32
    %1 = arith.extui %0 : i1 to i32
    %c0_i32_0 = arith.constant 0 : i32
    %2 = arith.cmpi ne, %1, %c0_i32_0 : i32
    scf.if %2 {
      %cst_10 = arith.constant 0.000000e+00 : f32
      %19 = vector.broadcast %cst_10 : f32 to vector<8x1xf32>
      %c0_11 = arith.constant 0 : index
      %c0_12 = arith.constant 0 : index
      %20 = vector.load %arg5[%c0_11, %c0_12] : memref<8x1xf32, #tpu.memory_space<vmem>>, vector<8x1xf32>
      tpu.vector_store %arg5[%c0_11, %c0_12], %19 {strides = array<i32>} : memref<8x1xf32, #tpu.memory_space<vmem>>, vector<8x1xf32>,
    } else {
    }
    %c0 = arith.constant 0 : index
    %c0_1 = arith.constant 0 : index
    %3 = vector.load %arg3[%c0, %c0_1] : memref<8x256xf32, #tpu.memory_space<vmem>>, vector<8x256xf32>
    %cst = arith.constant 9.99999997E-7 : f32
    %4 = vector.broadcast %cst : f32 to vector<8x256xf32>
    %5 = arith.maximumf %3, %4 : vector<8x256xf32>
    %c0_2 = arith.constant 0 : index
    %6 = memref.load %arg2[%c0_2] : memref<1xf32, #tpu.memory_space<smem>>
    %7 = math.log %5 : vector<8x256xf32>
    %8 = vector.broadcast %6 : f32 to vector<8x256xf32>
    %9 = arith.mulf %8, %7 : vector<8x256xf32>
    %10 = math.exp %9 : vector<8x256xf32>
    %c0_3 = arith.constant 0 : index
    %c0_4 = arith.constant 0 : index
    %11 = vector.load %arg5[%c0_3, %c0_4] : memref<8x1xf32, #tpu.memory_space<vmem>>, vector<8x1xf32>
    %cst_5 = arith.constant dense<0.000000e+00> : vector<8xf32>
    %12 = vector.multi_reduction <add>, %10, %cst_5 [1] : vector<8x256xf32> to vector<8xf32>
    %13 = vector.shape_cast %12 : vector<8xf32> to vector<8x1xf32>
    %14 = arith.addf %11, %13 : vector<8x1xf32>
    %c0_6 = arith.constant 0 : index
    %c0_7 = arith.constant 0 : index
    %15 = vector.load %arg5[%c0_6, %c0_7] : memref<8x1xf32, #tpu.memory_space<vmem>>, vector<8x1xf32>
    tpu.vector_store %arg5[%c0_6, %c0_7], %14 {strides = array<i32>} : memref<8x1xf32, #tpu.memory_space<vmem>>, vector<8x1xf32>,
    %c0_i32_8 = arith.constant 0 : i32
    %16 = arith.cmpi eq, %arg1, %c0_i32_8 : i32
    %17 = arith.extui %16 : i1 to i32
    %c0_i32_9 = arith.constant 0 : i32
    %18 = arith.cmpi ne, %17, %c0_i32_9 : i32
    scf.if %18 {
      %c0_10 = arith.constant 0 : index
      %c0_11 = arith.constant 0 : index
      %19 = vector.load %arg5[%c0_10, %c0_11] : memref<8x1xf32, #tpu.memory_space<vmem>>, vector<8x1xf32>
      %cst_12 = arith.constant 3.906250e-03 : f32
      %20 = vector.broadcast %cst_12 : f32 to vector<8x1xf32>
      %21 = arith.mulf %19, %20 : vector<8x1xf32>
      %c0_13 = arith.constant 0 : index
      %22 = memref.load %arg2[%c0_13] : memref<1xf32, #tpu.memory_space<smem>>
      %cst_14 = arith.constant 1.000000e+00 : f32
      %23 = arith.divf %cst_14, %22 : f32
      %24 = math.log %21 : vector<8x1xf32>
      %25 = vector.broadcast %23 : f32 to vector<8x1xf32>
      %26 = arith.mulf %24, %25 : vector<8x1xf32>
      %27 = math.exp %26 : vector<8x1xf32>
      %c0_15 = arith.constant 0 : index
      %c0_16 = arith.constant 0 : index
      %28 = vector.load %arg4[%c0_15, %c0_16] : memref<8x1xf32, #tpu.memory_space<vmem>>, vector<8x1xf32>
      tpu.vector_store %arg4[%c0_15, %c0_16], %27 {strides = array<i32>} : memref<8x1xf32, #tpu.memory_space<vmem>>, vector<8x1xf32>,
    } else {
    }
    return
  }
  func.func @transform_0(%arg0: i32, %arg1: i32) -> i32 {
    %c0_i32 = arith.constant 0 : i32
    %c0_i32_0 = arith.constant 0 : i32
    return %c0_i32 : i32
  }
  func.func @transform_1(%arg0: i32, %arg1: i32) -> (i32, i32) {
    %c0_i32 = arith.constant 0 : i32
    return %arg0, %arg1 : i32, i32
  }
  func.func @transform_2(%arg0: i32, %arg1: i32) -> (i32, i32) {
    %c0_i32 = arith.constant 0 : i32
    %c0_i32_0 = arith.constant 0 : i32
    return %arg0, %c0_i32 : i32, i32
  }
}

</mosaic_0001>

<bundles_post_ra>
// kernel: tpu_custom_call.1
= control target key start
LH: loop header
LB: loop body
LE: loop exit
PB: predicated region body
PF: predicated region fallthrough
CT: control target
= control target key end

     0   :  { %8 = vsyncpa [#allocation5], 0  ;;  %s133_s12 = smov [#allocation4]   ;;  %s162_s0 = inlined_call_operand.<no memory space> [shape: f32[1], index: 0, kind: input, shape index: {}]   ;;  %s163_s1 = inlined_call_operand.hbm [shape: f32[8,256], index: 1, kind: input, shape index: {}]   ;;  %s164_s2 = inlined_call_operand.vmem [shape: f32[8,1], index: 2, kind: output, shape index: {}]  }
   0x1   :  { %s16_s11 = sshll.u32 %s163_s1, 4  ;;  %s18_s13 = sshll.u32 %s133_s12, 4  ;;  %s17_s11 = int_to_ptr.hbm [resolvable:$true] %s16_s11  ;;  %s19_s13 = int_to_ptr.vmem [resolvable:$true] %s18_s13 }
   0x2   :  { %21 = dma.hbm_to_vmem [thread:$0]  %s17_s11, 256, %s19_s13, [#allocation5]  }
   0x3   :  { %131 = dma.done.wait [#allocation5], 256  }
   0x4   :  { %132 = vsyncadd [#allocation5], 4294967040  ;;  %vm30_vm0 = vcmask 7168   ;;  %v41_v0 = vstv %s162_s0  ;;  %v134_v1 = vmov 0.0   ;;  %v32_v3 = vld [vmem:[#allocation4] sm:$0xff]  ;;  %v33_v4 = vld [vmem:[#allocation4 + $0x8] sm:$0xff] }
   0x5   :  { %31 = vst.msk [vmem:[#allocation2] sm:$0xff] %vm30_vm0, %v134_v1  ;;  %93 = vrcp.f32 %v41_v0  ;;  %v34_v5 = vmax.f32 %v32_v3, 1e-06  ;;  %v35_v6 = vmax.f32 %v33_v4, 1e-06  ;;  %vm67_vm1 = vweird.f32 %v41_v0 }
   0x6   :  { %v73_v8 = vand.u32 2147483648, %v41_v0  ;;  %v71_v10 = vand.u32 2147483647, %v41_v0 }
   0x7   :  { %95 = vlog2.f32 %v34_v5 }
   0x8   :  { %97 = vlog2.f32 %v35_v6  ;;  %v74_v12 = vor.u32 1.1754944e-38, %v73_v8  ;;  %vm72_vm4 = vcmp.eq.f32.partialorder %v71_v10, 8.507059e+37 }
   0xb   :  { %v94_v2 = vpop.eup %93 }
   0xc   :  { %v63_v7 = vmul.f32 %v94_v2, %v41_v0  ;;  %vm68_vm2 = vweird.f32 %v94_v2  ;;  %v48_v27 = vld [vmem:[#allocation2] sm:$0xff] }
   0xd   :  { %vm69_vm3 = vmor %vm67_vm1, %vm68_vm2  ;;  %v96_v14 = vpop.eup %95 }
   0xe   :  { %v64_v9 = vsub.f32 1.0, %v63_v7  ;;  %v98_v16 = vpop.eup %97  ;;  %v38_v17 = vmul.f32 0.6931472, %v96_v14 }
   0xf   :  { %v40_v19 = vmul.f32 0.6931472, %v98_v16 }
  0x10   :  { %v65_v11 = vmul.f32 %v94_v2, %v64_v9  ;;  %v42_v20 = vmul.f32 %v41_v0, %v38_v17 }
  0x11   :  { %v43_v21 = vmul.f32 %v41_v0, %v40_v19 }
  0x12   :  { %v66_v13 = vadd.f32 %v94_v2, %v65_v11  ;;  %v44_v22 = vmul.f32 1.442695, %v42_v20 }
  0x13   :  { %v46_v23 = vmul.f32 1.442695, %v43_v21 }
  0x14   :  { %v70_v15 = vsel %vm69_vm3, %v94_v2, %v66_v13  ;;  %99 = vpow2.f32 %v44_v22 }
  0x15   :  { %v75_v18 = vsel %vm72_vm4, %v74_v12, %v70_v15  ;;  %101 = vpow2.f32 %v46_v23 }
  0x16   :  { %89 = vpush %v75_v18 }
  0x1a   :  { %v100_v24 = vpop.eup %99 }
  0x1b   :  { %v102_v25 = vpop.eup %101 }
  0x1c   :  { %v49_v26 = vadd.f32 %v102_v25, %v100_v24 }
  0x1e   :  { %50 = vadd.xlane.f32.xlu0 %v49_v26 }
  0x47   :  { %s90_s0 = spop %89 }
  0x48   :  { %v79_v33 = vstv %s90_s0 }
  0x91   :  { %v51_v28 = vpop.xlane.xlu0 %50 }
  0x92   :  { %v52_v29 = vadd.f32 %v51_v28, %v48_v27 }
  0x94   :  { %54 = vst.msk [vmem:[#allocation2] sm:$0xff] %vm30_vm0, %v52_v29 }
  0x9b   :  { %v58_v30 = vld [vmem:[#allocation2] sm:$0xff] }
  0x9c   :  { %v59_v31 = vmul.f32 0.00390625, %v58_v30 }
  0x9e   :  { %103 = vlog2.f32 %v59_v31 }
  0xa4   :  { %v104_v32 = vpop.eup %103 }
  0xa5   :  { %v78_v34 = vmul.f32 0.6931472, %v104_v32 }
  0xa7   :  { %v80_v35 = vmul.f32 %v79_v33, %v78_v34 }
  0xa9   :  { %v81_v36 = vmul.f32 1.442695, %v80_v35 }
  0xab   :  { %105 = vpow2.f32 %v81_v36 }
  0xb1   :  { %v106_v37 = vpop.eup %105 }
  0xb2   :  { %83 = vst.msk [vmem:[%s164_s2] sm:$0xff] %vm30_vm0, %v106_v37 }
  0xb3   :  { %88 = vsyncpa [#allocation5], 1 }

</bundles_post_ra>
